<compile_context>
chip_gen: v7x
topology: tpu7x:2x2x1
jax: 0.10.0
libtpu: 0.0.40
codegen_flags: <defaults>
</compile_context>

<pallas_src>
import functools

import jax
import jax.numpy as jnp
from jax.experimental import pallas as pl
from jax.experimental.pallas import tpu as pltpu


def _round_up(x, m):
    return (x + m - 1) // m * m


# ----------------------------------------------------------------------------
# Pallas kernel: fused 4-layer MLP on one batch tile.
# ----------------------------------------------------------------------------
def noisy_mlp_kernel(x_ref,
                     w1_ref, b1_ref,
                     w2_ref, b2_ref,
                     w3_ref, b3_ref,
                     w4_ref, b4_ref,
                     o_ref):
    x = x_ref[...]                                                  # (TB, K1) bf16

    h = jnp.dot(x, w1_ref[...], preferred_element_type=jnp.float32) + b1_ref[...]
    h = jnp.maximum(h, 0.0).astype(jnp.bfloat16)                    # (TB, 128)

    h = jnp.dot(h, w2_ref[...], preferred_element_type=jnp.float32) + b2_ref[...]
    h = jnp.maximum(h, 0.0).astype(jnp.bfloat16)                    # (TB, 256)

    h = jnp.dot(h, w3_ref[...], preferred_element_type=jnp.float32) + b3_ref[...]
    h = jnp.maximum(h, 0.0).astype(jnp.bfloat16)                    # (TB, 128)

    y = jnp.dot(h, w4_ref[...], preferred_element_type=jnp.float32) + b4_ref[...]
    o_ref[...] = y.astype(o_ref.dtype)                              # (TB, N_pad)


# ----------------------------------------------------------------------------
# Wrapper: batch padding + grid over batch, weights resident in VMEM.
# ----------------------------------------------------------------------------
def noisy_network_forward(x, params, n_actions, *, block_b=256):
    """x: (B, n_obs) float32. params: padded bf16 weights / f32 biases."""
    B, n_obs = x.shape
    K1 = params["w1"].shape[0]          # lane-padded n_obs (multiple of 128)
    N_pad = params["w4"].shape[1]       # lane-padded n_actions (multiple of 128)

    # Batch tile: big enough to fill the MXU M-dimension, but never bigger than
    # the (8-rounded) batch so tiny test batches still work.
    tb = min(block_b, _round_up(B, 8))
    b_pad = _round_up(B, tb)
    grid = (b_pad // tb,)

    # Zero-pad batch + features, cast activations to bf16 (MXU-native operand).
    xp = jnp.zeros((b_pad, K1), jnp.bfloat16)
    xp = xp.at[:B, :n_obs].set(x.astype(jnp.bfloat16))

    def resident(arr):  # full-array block, never re-fetched across grid steps
        return pl.BlockSpec(arr.shape, lambda i: (0, 0))

    flops = 2 * b_pad * (K1 * 128 + 128 * 256 + 256 * 128 + 128 * N_pad)
    weight_bytes = sum(int(v.size) * v.dtype.itemsize for v in params.values())
    bytes_accessed = int(xp.size) * 2 + b_pad * N_pad * 4 + weight_bytes

    out = pl.pallas_call(
        noisy_mlp_kernel,
        out_shape=jax.ShapeDtypeStruct((b_pad, N_pad), jnp.float32),
        grid=grid,
        in_specs=[
            pl.BlockSpec((tb, K1), lambda i: (i, 0)),
            resident(params["w1"]), resident(params["b1"]),
            resident(params["w2"]), resident(params["b2"]),
            resident(params["w3"]), resident(params["b3"]),
            resident(params["w4"]), resident(params["b4"]),
        ],
        out_specs=pl.BlockSpec((tb, N_pad), lambda i: (i, 0)),
        compiler_params=pltpu.CompilerParams(
            dimension_semantics=("parallel",)),
        cost_estimate=pl.CostEstimate(
            flops=flops, transcendentals=0, bytes_accessed=bytes_accessed),
    )(xp,
      params["w1"], params["b1"],
      params["w2"], params["b2"],
      params["w3"], params["b3"],
      params["w4"], params["b4"])

    return out[:B, :n_actions]


# ----------------------------------------------------------------------------
# Deterministic parameter construction (plain-JAX glue).
# ----------------------------------------------------------------------------
def _linear_params(key, fan_in, fan_out):
    """PyTorch nn.Linear-style init: U(-1/sqrt(fan_in), 1/sqrt(fan_in))."""
    kw, kb = jax.random.split(key)
    bound = 1.0 / jnp.sqrt(float(fan_in))
    w = jax.random.uniform(kw, (fan_in, fan_out), jnp.float32, -bound, bound)
    b = jax.random.uniform(kb, (1, fan_out), jnp.float32, -bound, bound)
    return w, b


def _noisy_linear_params(key, fan_in, fan_out, sigma_0=0.5):
    """NoisyLinear with factorized Gaussian noise; returns effective (W, b)."""
    kmu_w, kmu_b, kin, kout = jax.random.split(key, 4)
    bound = 1.0 / jnp.sqrt(float(fan_in))
    w_mu = jax.random.uniform(kmu_w, (fan_in, fan_out), jnp.float32, -bound, bound)
    b_mu = jax.random.uniform(kmu_b, (1, fan_out), jnp.float32, -bound, bound)
    sigma = sigma_0 / jnp.sqrt(float(fan_in))
    w_sigma = jnp.full((fan_in, fan_out), sigma, jnp.float32)
    b_sigma = jnp.full((1, fan_out), sigma, jnp.float32)

    def f(e):
        return jnp.sign(e) * jnp.sqrt(jnp.abs(e))

    eps_in = f(jax.random.normal(kin, (fan_in,), jnp.float32))
    eps_out = f(jax.random.normal(kout, (fan_out,), jnp.float32))
    w_eff = w_mu + w_sigma * jnp.outer(eps_in, eps_out)
    b_eff = b_mu + b_sigma * eps_out[None, :]
    return w_eff, b_eff


def make_params(key, n_obs, n_actions):
    """Returns (kernel_params, ref_params).

    kernel_params: pre-transposed (in,out), lane-padded, bf16 weights / f32 biases.
    ref_params:    unpadded f32 for the pure-JAX reference.
    """
    k1, k2, k3, k4 = jax.random.split(key, 4)
    w1, b1 = _linear_params(k1, n_obs, 128)
    w2, b2 = _linear_params(k2, 128, 256)
    w3, b3 = _noisy_linear_params(k3, 256, 128)      # NoisyLinear(256, 128)
    w4, b4 = _noisy_linear_params(k4, 128, n_actions)  # NoisyLinear(128, n_actions)

    k1_pad = _round_up(n_obs, 128)
    n_pad = _round_up(n_actions, 128)

    w1p = jnp.zeros((k1_pad, 128), jnp.float32).at[:n_obs, :].set(w1)
    w4p = jnp.zeros((128, n_pad), jnp.float32).at[:, :n_actions].set(w4)
    b4p = jnp.zeros((1, n_pad), jnp.float32).at[:, :n_actions].set(b4)

    kernel_params = dict(
        w1=w1p.astype(jnp.bfloat16), b1=b1,
        w2=w2.astype(jnp.bfloat16), b2=b2,
        w3=w3.astype(jnp.bfloat16), b3=b3,
        w4=w4p.astype(jnp.bfloat16), b4=b4p,
    )
    ref_params = dict(w1=w1, b1=b1, w2=w2, b2=b2, w3=w3, b3=b3, w4=w4, b4=b4)
    return kernel_params, ref_params


# ----------------------------------------------------------------------------
if __name__ == "__main__":
    key = jax.random.PRNGKey(0)
    kx, kp = jax.random.split(key)

    n_obs = 32          # n_obs[0] in the torch module
    n_actions = 8
    batch = 256         # fills the MXU M-dimension; tiled as 2 x 128-row blocks

    x = jax.random.normal(kx, (batch, n_obs), jnp.float32)
    kernel_params, ref_params = make_params(kp, n_obs, n_actions)

    fwd = jax.jit(functools.partial(
        noisy_network_forward, n_actions=n_actions, block_b=128))
    out = jax.block_until_ready(fwd(x, kernel_params))

    # Pure-JAX reference using the same bf16-rounded matmul operands.
    def ref(x, p):
        bf = lambda a: a.astype(jnp.bfloat16).astype(jnp.float32)
        h = jnp.maximum(bf(x) @ bf(p["w1"]) + p["b1"], 0.0)
        h = jnp.maximum(bf(h) @ bf(p["w2"]) + p["b2"], 0.0)
        h = jnp.maximum(bf(h) @ bf(p["w3"]) + p["b3"], 0.0)
        return bf(h) @ bf(p["w4"]) + p["b4"]

    r = ref(x, ref_params)
    assert out.shape == (batch, n_actions)
    assert jnp.allclose(out, r, atol=1e-2, rtol=1e-2), float(
        jnp.max(jnp.abs(out - r)))

    print("KERNEL_OK")
</pallas_src>

<mosaic_0001>
module attributes {stable_mosaic.version = 11 : i64} {
  func.func @noisy_mlp_kernel(%arg0: i32, %arg1: memref<128x128xbf16, #tpu.memory_space<vmem>>, %arg2: memref<128x128xbf16, #tpu.memory_space<vmem>>, %arg3: memref<1x128xf32, #tpu.memory_space<vmem>>, %arg4: memref<128x256xbf16, #tpu.memory_space<vmem>>, %arg5: memref<1x256xf32, #tpu.memory_space<vmem>>, %arg6: memref<256x128xbf16, #tpu.memory_space<vmem>>, %arg7: memref<1x128xf32, #tpu.memory_space<vmem>>, %arg8: memref<128x128xbf16, #tpu.memory_space<vmem>>, %arg9: memref<1x128xf32, #tpu.memory_space<vmem>>, %arg10: memref<128x128xf32, #tpu.memory_space<vmem>>) attributes {dimension_semantics = [#tpu.dimension_semantics<parallel>], iteration_bounds = array<i64: 2>, scalar_prefetch = 0 : i64, scratch_operands = 0 : i64, tpu.core_type = #tpu.core_type<tc>, window_params = [{transform_indices = @transform_0, window_bounds = array<i64: 128, 128>}, {pipeline_mode = #tpu.pipeline_mode<synchronous>, transform_indices = @transform_1, window_bounds = array<i64: 128, 128>}, {pipeline_mode = #tpu.pipeline_mode<synchronous>, transform_indices = @transform_2, window_bounds = array<i64: 1, 128>}, {pipeline_mode = #tpu.pipeline_mode<synchronous>, transform_indices = @transform_3, window_bounds = array<i64: 128, 256>}, {pipeline_mode = #tpu.pipeline_mode<synchronous>, transform_indices = @transform_4, window_bounds = array<i64: 1, 256>}, {pipeline_mode = #tpu.pipeline_mode<synchronous>, transform_indices = @transform_5, window_bounds = array<i64: 256, 128>}, {pipeline_mode = #tpu.pipeline_mode<synchronous>, transform_indices = @transform_6, window_bounds = array<i64: 1, 128>}, {pipeline_mode = #tpu.pipeline_mode<synchronous>, transform_indices = @transform_7, window_bounds = array<i64: 128, 128>}, {pipeline_mode = #tpu.pipeline_mode<synchronous>, transform_indices = @transform_8, window_bounds = array<i64: 1, 128>}, {transform_indices = @transform_9, window_bounds = array<i64: 128, 128>}]} {
    %c0 = arith.constant 0 : index
    %c0_0 = arith.constant 0 : index
    %0 = vector.load %arg1[%c0, %c0_0] : memref<128x128xbf16, #tpu.memory_space<vmem>>, vector<128x128xbf16>
    %c0_1 = arith.constant 0 : index
    %c0_2 = arith.constant 0 : index
    %1 = vector.load %arg2[%c0_1, %c0_2] : memref<128x128xbf16, #tpu.memory_space<vmem>>, vector<128x128xbf16>
    %cst = arith.constant dense<0.000000e+00> : vector<128x128xf32>
    %2 = tpu.matmul %0, %1, %cst {dimension_numbers = #tpu.dot_dimension_numbers<[1], [0], [0], [1], [0, 0, 1, 1], [], []>} : vector<128x128xbf16>, vector<128x128xbf16>, vector<128x128xf32> -> vector<128x128xf32>
    %c0_3 = arith.constant 0 : index
    %c0_4 = arith.constant 0 : index
    %3 = vector.load %arg3[%c0_3, %c0_4] : memref<1x128xf32, #tpu.memory_space<vmem>>, vector<1x128xf32>
    %4 = vector.broadcast %3 : vector<1x128xf32> to vector<128x128xf32>
    %5 = arith.addf %2, %4 : vector<128x128xf32>
    %cst_5 = arith.constant 0.000000e+00 : f32
    %6 = vector.broadcast %cst_5 : f32 to vector<128x128xf32>
    %7 = arith.maximumf %5, %6 : vector<128x128xf32>
    %8 = arith.truncf %7 : vector<128x128xf32> to vector<128x128xbf16>
    %c0_6 = arith.constant 0 : index
    %c0_7 = arith.constant 0 : index
    %9 = vector.load %arg4[%c0_6, %c0_7] : memref<128x256xbf16, #tpu.memory_space<vmem>>, vector<128x256xbf16>
    %cst_8 = arith.constant dense<0.000000e+00> : vector<128x256xf32>
    %10 = tpu.matmul %8, %9, %cst_8 {dimension_numbers = #tpu.dot_dimension_numbers<[1], [0], [0], [1], [0, 0, 1, 1], [], []>} : vector<128x128xbf16>, vector<128x256xbf16>, vector<128x256xf32> -> vector<128x256xf32>
    %c0_9 = arith.constant 0 : index
    %c0_10 = arith.constant 0 : index
    %11 = vector.load %arg5[%c0_9, %c0_10] : memref<1x256xf32, #tpu.memory_space<vmem>>, vector<1x256xf32>
    %12 = vector.broadcast %11 : vector<1x256xf32> to vector<128x256xf32>
    %13 = arith.addf %10, %12 : vector<128x256xf32>
    %cst_11 = arith.constant 0.000000e+00 : f32
    %14 = vector.broadcast %cst_11 : f32 to vector<128x256xf32>
    %15 = arith.maximumf %13, %14 : vector<128x256xf32>
    %16 = arith.truncf %15 : vector<128x256xf32> to vector<128x256xbf16>
    %c0_12 = arith.constant 0 : index
    %c0_13 = arith.constant 0 : index
    %17 = vector.load %arg6[%c0_12, %c0_13] : memref<256x128xbf16, #tpu.memory_space<vmem>>, vector<256x128xbf16>
    %cst_14 = arith.constant dense<0.000000e+00> : vector<128x128xf32>
    %18 = tpu.matmul %16, %17, %cst_14 {dimension_numbers = #tpu.dot_dimension_numbers<[1], [0], [0], [1], [0, 0, 1, 1], [], []>} : vector<128x256xbf16>, vector<256x128xbf16>, vector<128x128xf32> -> vector<128x128xf32>
    %c0_15 = arith.constant 0 : index
    %c0_16 = arith.constant 0 : index
    %19 = vector.load %arg7[%c0_15, %c0_16] : memref<1x128xf32, #tpu.memory_space<vmem>>, vector<1x128xf32>
    %20 = vector.broadcast %19 : vector<1x128xf32> to vector<128x128xf32>
    %21 = arith.addf %18, %20 : vector<128x128xf32>
    %cst_17 = arith.constant 0.000000e+00 : f32
    %22 = vector.broadcast %cst_17 : f32 to vector<128x128xf32>
    %23 = arith.maximumf %21, %22 : vector<128x128xf32>
    %24 = arith.truncf %23 : vector<128x128xf32> to vector<128x128xbf16>
    %c0_18 = arith.constant 0 : index
    %c0_19 = arith.constant 0 : index
    %25 = vector.load %arg8[%c0_18, %c0_19] : memref<128x128xbf16, #tpu.memory_space<vmem>>, vector<128x128xbf16>
    %cst_20 = arith.constant dense<0.000000e+00> : vector<128x128xf32>
    %26 = tpu.matmul %24, %25, %cst_20 {dimension_numbers = #tpu.dot_dimension_numbers<[1], [0], [0], [1], [0, 0, 1, 1], [], []>} : vector<128x128xbf16>, vector<128x128xbf16>, vector<128x128xf32> -> vector<128x128xf32>
    %c0_21 = arith.constant 0 : index
    %c0_22 = arith.constant 0 : index
    %27 = vector.load %arg9[%c0_21, %c0_22] : memref<1x128xf32, #tpu.memory_space<vmem>>, vector<1x128xf32>
    %28 = vector.broadcast %27 : vector<1x128xf32> to vector<128x128xf32>
    %29 = arith.addf %26, %28 : vector<128x128xf32>
    %c0_23 = arith.constant 0 : index
    %c0_24 = arith.constant 0 : index
    %30 = vector.load %arg10[%c0_23, %c0_24] : memref<128x128xf32, #tpu.memory_space<vmem>>, vector<128x128xf32>
    tpu.vector_store %arg10[%c0_23, %c0_24], %29 {strides = array<i32>} : memref<128x128xf32, #tpu.memory_space<vmem>>, vector<128x128xf32>,
    return
  }
  func.func @transform_0(%arg0: i32) -> (i32, i32) {
    %c0_i32 = arith.constant 0 : i32
    %c0_i32_0 = arith.constant 0 : i32
    return %arg0, %c0_i32 : i32, i32
  }
  func.func @transform_1(%arg0: i32) -> (i32, i32) {
    %c0_i32 = arith.constant 0 : i32
    %c0_i32_0 = arith.constant 0 : i32
    %c0_i32_1 = arith.constant 0 : i32
    return %c0_i32, %c0_i32_0 : i32, i32
  }
  func.func @transform_2(%arg0: i32) -> (i32, i32) {
    %c0_i32 = arith.constant 0 : i32
    %c0_i32_0 = arith.constant 0 : i32
    %c0_i32_1 = arith.constant 0 : i32
    return %c0_i32, %c0_i32_0 : i32, i32
  }
  func.func @transform_3(%arg0: i32) -> (i32, i32) {
    %c0_i32 = arith.constant 0 : i32
    %c0_i32_0 = arith.constant 0 : i32
    %c0_i32_1 = arith.constant 0 : i32
    return %c0_i32, %c0_i32_0 : i32, i32
  }
  func.func @transform_4(%arg0: i32) -> (i32, i32) {
    %c0_i32 = arith.constant 0 : i32
    %c0_i32_0 = arith.constant 0 : i32
    %c0_i32_1 = arith.constant 0 : i32
    return %c0_i32, %c0_i32_0 : i32, i32
  }
  func.func @transform_5(%arg0: i32) -> (i32, i32) {
    %c0_i32 = arith.constant 0 : i32
    %c0_i32_0 = arith.constant 0 : i32
    %c0_i32_1 = arith.constant 0 : i32
    return %c0_i32, %c0_i32_0 : i32, i32
  }
  func.func @transform_6(%arg0: i32) -> (i32, i32) {
    %c0_i32 = arith.constant 0 : i32
    %c0_i32_0 = arith.constant 0 : i32
    %c0_i32_1 = arith.constant 0 : i32
    return %c0_i32, %c0_i32_0 : i32, i32
  }
  func.func @transform_7(%arg0: i32) -> (i32, i32) {
    %c0_i32 = arith.constant 0 : i32
    %c0_i32_0 = arith.constant 0 : i32
    %c0_i32_1 = arith.constant 0 : i32
    return %c0_i32, %c0_i32_0 : i32, i32
  }
  func.func @transform_8(%arg0: i32) -> (i32, i32) {
    %c0_i32 = arith.constant 0 : i32
    %c0_i32_0 = arith.constant 0 : i32
    %c0_i32_1 = arith.constant 0 : i32
    return %c0_i32, %c0_i32_0 : i32, i32
  }
  func.func @transform_9(%arg0: i32) -> (i32, i32) {
    %c0_i32 = arith.constant 0 : i32
    %c0_i32_0 = arith.constant 0 : i32
    return %arg0, %c0_i32 : i32, i32
  }
}

</mosaic_0001>

<bundles_post_ra>
// kernel: noisy_network_forward.1
= control target key start
LH: loop header
LB: loop body
LE: loop exit
PB: predicated region body
PF: predicated region fallthrough
CT: control target
= control target key end

     0   :  { %s1720_s30 = smov 0   ;;  %s1987_s0 = inlined_call_operand.vmem [shape: bf16[256,128], index: 0, kind: input, shape index: {}]   ;;  %s1988_s1 = inlined_call_operand.vmem [shape: bf16[128,128], index: 1, kind: input, shape index: {}]   ;;  %s1989_s2 = inlined_call_operand.vmem [shape: f32[1,128], index: 2, kind: input, shape index: {}]   ;;  %s1990_s3 = inlined_call_operand.vmem [shape: bf16[128,256], index: 3, kind: input, shape index: {}]   ;;  %s1991_s4 = inlined_call_operand.vmem [shape: f32[1,256], index: 4, kind: input, shape index: {}]   ;;  %s1992_s5 = inlined_call_operand.vmem [shape: bf16[256,128], index: 5, kind: input, shape index: {}]   ;;  %s1993_s6 = inlined_call_operand.vmem [shape: f32[1,128], index: 6, kind: input, shape index: {}]   ;;  %s1994_s7 = inlined_call_operand.vmem [shape: bf16[128,128], index: 7, kind: input, shape index: {}]   ;;  %s1995_s8 = inlined_call_operand.vmem [shape: f32[1,128], index: 8, kind: input, shape index: {}]   ;;  %s1996_s9 = inlined_call_operand.vmem [shape: f32[256,128], index: 9, kind: output, shape index: {}]  }
   0x1 LB: > { %s1358_s10 = sadd.s32 4294967295, %s1667_s30   ;;  %p1362_p0 = scmp.ge.s32.totalorder %s1667_s30, 1  ;;  %s1667_s30 = sphi %s1720_s30, %s19_s30  }
   0x2   : > { %p288_p1 = scmp.lt.s32.totalorder %s1667_s30, 3 }
   0x4   : > { %p289_p2 = pnand %p1362_p0, %p288_p1 }
   0x5   : > { %v1597_v0 = vld [vmem:[%s1988_s1] sm:$0xff] (!%p289_p2)   ;;  %s1363_s13 = sshll.u32 (!%p289_p2), %s1358_s10, 4  ;;  %v1598_v1 = vld [vmem:[%s1988_s1 + $0x8] sm:$0xff] (!%p289_p2)   ;;  %v1599_v2 = vld [vmem:[%s1988_s1 + $0x10] sm:$0xff] (!%p289_p2)   ;;  %v1669_v32 = vmov (!%p289_p2), 0  }
   0x6   : > { %292 = sbr.rel (%p289_p2) target bundleno = 978 (0x3d2), region = 56  ;;  %p325_p3 = scmp.lt.s32.totalorder (!%p289_p2), %s1363_s13, 31  ;;  %1524 = vmatprep.subr.bf16.mxu0 (!%p289_p2), %v1597_v0  ;;  %v1600_v3 = vld [vmem:[%s1988_s1 + $0x18] sm:$0xff] (!%p289_p2)   ;;  %v1601_v5 = vld [vmem:[%s1988_s1 + $0x20] sm:$0xff] (!%p289_p2)   ;;  %v1602_v6 = vld [vmem:[%s1988_s1 + $0x28] sm:$0xff] (!%p289_p2)   ;;  %733 = vmatprep.mubr.bf16.mxu1 (!%p289_p2), %v1669_v32 }
   0x7   : > { %1525 = vmatpush3.bf16.msra.mxu0 (!%p289_p2), %v1597_v0  ;;  %v1613_v7 = vld [vmem:[%s1990_s3 + $0x4] ss:$8 sps:$4 sm:$0xff] (!%p289_p2)   ;;  %v1615_v8 = vld [vmem:[%s1990_s3] ss:$8 sps:$4 sm:$0xff] (!%p289_p2)   ;;  %v1616_v9 = vld [vmem:[%s1990_s3 + $0x14] ss:$8 sps:$4 sm:$0xff] (!%p289_p2)  }
   0x8   : > { %1526 = vmatprep.subr.bf16.mxu0 (!%p289_p2), %v1598_v1  ;;  %701 = vmatprep.subr.bf16.mxu1 (!%p289_p2), %v1613_v7  ;;  %v1603_v10 = vld [vmem:[%s1988_s1 + $0x30] sm:$0xff] (!%p289_p2)   ;;  %v1619_v12 = vld [vmem:[%s1990_s3 + $0x24] ss:$8 sps:$4 sm:$0xff] (!%p289_p2)   ;;  %v1604_v13 = vld [vmem:[%s1988_s1 + $0x38] sm:$0xff] (!%p289_p2)  }
   0x9   : > { %702 = vmatpush1.bf16.msra.mxu1 (!%p289_p2), %v1615_v8  ;;  %v1618_v11 = vld [vmem:[%s1990_s3 + $0x10] ss:$8 sps:$4 sm:$0xff] (!%p289_p2)   ;;  %v1621_v14 = vld [vmem:[%s1990_s3 + $0x20] ss:$8 sps:$4 sm:$0xff] (!%p289_p2)   ;;  %v1622_v15 = vld [vmem:[%s1990_s3 + $0x34] ss:$8 sps:$4 sm:$0xff] (!%p289_p2)  }
   0xa   : > { %703 = vmatprep.subr.bf16.mxu1 (!%p289_p2), %v1616_v9  ;;  %v1624_v16 = vld [vmem:[%s1990_s3 + $0x30] ss:$8 sps:$4 sm:$0xff] (!%p289_p2)   ;;  %v1625_v17 = vld [vmem:[%s1990_s3 + $0x44] ss:$8 sps:$4 sm:$0xff] (!%p289_p2)   ;;  %v1627_v20 = vld [vmem:[%s1990_s3 + $0x40] ss:$8 sps:$4 sm:$0xff] (!%p289_p2)  }
   0xb   : > { %1527 = vmatpush3.bf16.msra.mxu0 (!%p289_p2), %v1598_v1  ;;  %v1628_v21 = vld [vmem:[%s1990_s3 + $0x54] ss:$8 sps:$4 sm:$0xff] (!%p289_p2)   ;;  %v1630_v22 = vld [vmem:[%s1990_s3 + $0x50] ss:$8 sps:$4 sm:$0xff] (!%p289_p2)   ;;  %v1631_v28 = vld [vmem:[%s1990_s3 + $0x64] ss:$8 sps:$4 sm:$0xff] (!%p289_p2)  }
   0xc   : > { %1528 = vmatprep.subr.bf16.mxu0 (!%p289_p2), %v1599_v2  ;;  %v1633_v29 = vld [vmem:[%s1990_s3 + $0x60] ss:$8 sps:$4 sm:$0xff] (!%p289_p2)   ;;  %v1634_v30 = vld [vmem:[%s1990_s3 + $0x74] ss:$8 sps:$4 sm:$0xff] (!%p289_p2)   ;;  %v1636_v31 = vld [vmem:[%s1990_s3 + $0x70] ss:$8 sps:$4 sm:$0xff] (!%p289_p2)  }
   0xd   : > { %s1998_s13 = smov (!%p325_p3, %s1363_s13), 31  ;;  %704 = vmatpush1.bf16.msra.mxu1 %v1618_v11  ;;  %v1637_v33 = vld [vmem:[%s1992_s5 + $0x40] sm:$0xff]   ;;  %v1639_v35 = vld [vmem:[%s1992_s5 + $0x48] sm:$0xff]   ;;  %v1641_v37 = vld [vmem:[%s1992_s5 + $0x50] sm:$0xff]  }
   0xe   : > { %s1364_s18 = sshll.u32 %s1998_s13, 2  ;;  %705 = vmatprep.subr.bf16.mxu1 %v1619_v12  ;;  %v1638_v34 = vld [vmem:[%s1992_s5] sm:$0xff]   ;;  %v1640_v36 = vld [vmem:[%s1992_s5 + $0x8] sm:$0xff]   ;;  %v1642_v38 = vld [vmem:[%s1992_s5 + $0x10] sm:$0xff]   ;;  %s1366_s25 = sshll.u32 %s1998_s13, 3 }
   0xf   : > { %s1743_s21 = scalar_lea.vmem %s1987_s0, %s1364_s18  ;;  %1529 = vmatpush3.bf16.msra.mxu0 %v1599_v2  ;;  %v1643_v39 = vld [vmem:[%s1992_s5 + $0x58] sm:$0xff]   ;;  %v1645_v41 = vld [vmem:[%s1992_s5 + $0x60] sm:$0xff]   ;;  %v1647_v43 = vld [vmem:[%s1992_s5 + $0x68] sm:$0xff]   ;;  %s1966_s29 = scalar_lea.vmem %s1996_s9, %s1366_s25 }
  0x10   : > { %v1605_v4 = vld [vmem:[%s1743_s21] sm:$0xff]   ;;  %1530 = vmatprep.subr.bf16.mxu0 %v1600_v3  ;;  %v1606_v18 = vld [vmem:[%s1743_s21 + $0x8] sm:$0xff]   ;;  %v1607_v19 = vld [vmem:[%s1743_s21 + $0x10] sm:$0xff]  }
  0x11   : > { %1540 = vmatprep.mubr.bf16.mxu0 %v1605_v4  ;;  %706 = vmatpush1.bf16.msra.mxu1 %v1621_v14  ;;  %v1608_v23 = vld [vmem:[%s1743_s21 + $0x18] sm:$0xff]   ;;  %v1609_v24 = vld [vmem:[%s1743_s21 + $0x20] sm:$0xff]   ;;  %v1610_v25 = vld [vmem:[%s1743_s21 + $0x28] sm:$0xff]  }
  0x12   : > { %707 = vmatprep.subr.bf16.mxu1 %v1622_v15  ;;  %v1611_v26 = vld [vmem:[%s1743_s21 + $0x30] sm:$0xff]   ;;  %v1612_v27 = vld [vmem:[%s1743_s21 + $0x38] sm:$0xff]   ;;  %v1646_v42 = vld [vmem:[%s1992_s5 + $0x20] sm:$0xff]  }
  0x13   : > { %1531 = vmatpush3.bf16.msra.mxu0 %v1600_v3  ;;  %v1644_v40 = vld [vmem:[%s1992_s5 + $0x18] sm:$0xff]   ;;  %v1648_v44 = vld [vmem:[%s1992_s5 + $0x28] sm:$0xff]   ;;  %v1367_v45 = vld [vmem:[%s1989_s2] ss:$0 sm:$0xff] }
  0x14   : > { %1532 = vmatprep.subr.bf16.mxu0 %v1601_v5 }
  0x15   : > { %708 = vmatpush1.bf16.msra.mxu1 %v1624_v16 }
  0x16   : > { %709 = vmatprep.subr.bf16.mxu1 %v1625_v17 }
  0x17   : > { %1533 = vmatpush3.bf16.msra.mxu0 %v1601_v5 }
  0x18   : > { %1534 = vmatprep.subr.bf16.mxu0 %v1602_v6 }
  0x19   : > { %710 = vmatpush1.bf16.msra.mxu1 %v1627_v20 }
  0x1a   : > { %711 = vmatprep.subr.bf16.mxu1 %v1628_v21 }
  0x1b   : > { %1535 = vmatpush3.bf16.msra.mxu0 %v1602_v6 }
  0x1c   : > { %1536 = vmatprep.subr.bf16.mxu0 %v1603_v10 }
  0x1d   : > { %712 = vmatpush1.bf16.msra.mxu1 %v1630_v22 }
  0x1e   : > { %713 = vmatprep.subr.bf16.mxu1 %v1631_v28 }
  0x1f   : > { %1537 = vmatpush3.bf16.msra.mxu0 %v1603_v10 }
  0x20   : > { %1538 = vmatprep.subr.bf16.mxu0 %v1604_v13 }
  0x21   : > { %714 = vmatpush1.bf16.msra.mxu1 %v1633_v29 }
  0x22   : > { %715 = vmatprep.subr.bf16.mxu1 %v1634_v30 }
  0x23   : > { %1539 = vmatpush3.bf16.msra.mxu0 %v1604_v13 }
  0x24   : > { %1444 = vmatprep.subr.bf16.mxu0 %v1637_v33 }
  0x25   : > { %716 = vmatpush1.bf16.msra.mxu1 %v1636_v31 }
  0x26   : > { %1541 = vmatmul.mubr.bf16.vlgmr.msra.gmra.mrb[0].mxu0 %v1606_v18 }
  0x27   : > { %1544 = vmatprep.mubr.bf16.mxu0 %v1607_v19  ;;  %1445 = vmatpush3.bf16.msra.mxu0 %v1638_v34 }
  0x28   : > { %1446 = vmatprep.subr.bf16.mxu0 %v1639_v35 }
  0x2b   : > { %1447 = vmatpush3.bf16.msra.mxu0 %v1640_v36 }
  0x2c   : > { %1448 = vmatprep.subr.bf16.mxu0 %v1641_v37 }
  0x2e   : > { %1545 = vmatmul.mubr.bf16.gmra.mrb[4].mxu0 %v1608_v23 }
  0x2f   : > { %1548 = vmatprep.mubr.bf16.mxu0 %v1609_v24  ;;  %1449 = vmatpush3.bf16.msra.mxu0 %v1642_v38 }
  0x30   : > { %1450 = vmatprep.subr.bf16.mxu0 %v1643_v39  ;;  %v1649_v39 = vld [vmem:[%s1992_s5 + $0x70] sm:$0xff]  }
  0x33   : > { %1451 = vmatpush3.bf16.msra.mxu0 %v1644_v40  ;;  %v1650_v40 = vld [vmem:[%s1992_s5 + $0x30] sm:$0xff]  }
  0x34   : > { %1452 = vmatprep.subr.bf16.mxu0 %v1645_v41  ;;  %v1651_v41 = vld [vmem:[%s1992_s5 + $0x78] sm:$0xff]  }
  0x36   : > { %1549 = vmatmul.mubr.bf16.gmra.mrb[8].mxu0 %v1610_v25 }
  0x37   : > { %1552 = vmatprep.mubr.bf16.mxu0 %v1611_v26  ;;  %1453 = vmatpush3.bf16.msra.mxu0 %v1646_v42  ;;  %v1652_v42 = vld [vmem:[%s1992_s5 + $0x38] sm:$0xff]  }
  0x38   : > { %1454 = vmatprep.subr.bf16.mxu0 %v1647_v43  ;;  %v1654_v43 = vld [vmem:[%s1994_s7 + $0x8] sm:$0xff]  }
  0x3b   : > { %1455 = vmatpush3.bf16.msra.mxu0 %v1648_v44  ;;  %v1655_v44 = vld [vmem:[%s1994_s7 + $0x10] sm:$0xff]  }
  0x3c   : > { %1456 = vmatprep.subr.bf16.mxu0 %v1649_v39 }
  0x3e   : > { %1553 = vmatmul.mubr.bf16.gmra.mrb[12].mxu0 %v1612_v27 }
  0x3f   : > { %1457 = vmatpush3.bf16.msra.mxu0 %v1650_v40 }
  0x40   : > { %1458 = vmatprep.subr.bf16.mxu0 %v1651_v41 }
  0x43   : > { %1459 = vmatpush3.bf16.msra.mxu0 %v1652_v42 }
  0xf9   : > { %v1542_v46 = vpop.f32.mrb[0].mxu0 }
  0xfa   : > { %v515_v47 = vadd.f32 %v1542_v46, %v1367_v45  ;;  %v506_v48 = vpop.f32.mrb[1].mxu0 }
  0xfb   : > { %v507_v49 = vadd.f32 %v1367_v45, %v506_v48  ;;  %v1543_v50 = vpop.f32.mrb[2].mxu0  ;;  %v609_v48 = vld [vmem:[%s1991_s4] sm:$0x3] }
  0xfc   : > { %v518_v51 = vadd.f32 %v1543_v50, %v1367_v45  ;;  %v509_v52 = vpop.f32.mrb[3].mxu0  ;;  %v571_v54 = vmax.f32 %v515_v47, 0.0 }
  0xfd   : > { %v510_v53 = vadd.f32 %v1367_v45, %v509_v52  ;;  %v569_v56 = vmax.f32 %v507_v49, 0.0 }
  0xfe   : > { %v572_v55 = vmax.f32 %v518_v51, 0.0 }
  0xff   : > { %v570_v57 = vmax.f32 %v510_v53, 0.0 }
 0x100   : > { %v586_v58 = vpack.c.bf16 %v572_v55, %v571_v54 }
 0x101   : > { %v585_v59 = vpack.c.bf16 %v570_v57, %v569_v56  ;;  %v1546_v60 = vpop.f32.mrb[4].mxu0 }
 0x102   : > { %v531_v61 = vadd.f32 %v1546_v60, %v1367_v45  ;;  %v522_v62 = vpop.f32.mrb[5].mxu0 }
 0x103   : > { %734 = vmatmul.mubr.bf16.vlgmr.msra.gmra.mrb[0].mxu1 %v585_v59  ;;  %v523_v63 = vadd.f32 %v1367_v45, %v522_v62  ;;  %v1547_v0 = vpop.f32.mrb[6].mxu0 }
 0x104   : > { %v575_v1 = vmax.f32 %v531_v61, 0.0  ;;  %v534_v2 = vadd.f32 %v1547_v0, %v1367_v45  ;;  %v525_v3 = vpop.f32.mrb[7].mxu0  ;;  %743 = vmatprep.mubr.bf16.mxu1 %v1669_v32 }
 0x105   : > { %v573_v4 = vmax.f32 %v523_v63, 0.0  ;;  %v526_v5 = vadd.f32 %v1367_v45, %v525_v3 }
 0x106   : > { %v576_v6 = vmax.f32 %v534_v2, 0.0 }
 0x107   : > { %v574_v7 = vmax.f32 %v526_v5, 0.0 }
 0x108   : > { %v588_v8 = vpack.c.bf16 %v576_v6, %v575_v1 }
 0x109   : > { %v587_v9 = vpack.c.bf16 %v574_v7, %v573_v4  ;;  %v1550_v10 = vpop.f32.mrb[8].mxu0 }
 0x10a   : > { %v547_v11 = vadd.f32 %v1550_v10, %v1367_v45  ;;  %v538_v12 = vpop.f32.mrb[9].mxu0 }
 0x10b   : > { %744 = vmatmul.mubr.bf16.gmra.mrb[4].mxu1 %v586_v58  ;;  %v539_v13 = vadd.f32 %v1367_v45, %v538_v12  ;;  %v1551_v14 = vpop.f32.mrb[10].mxu0 }
 0x10c   : > { %753 = vmatprep.mubr.bf16.mxu1 %v1669_v32  ;;  %v579_v15 = vmax.f32 %v547_v11, 0.0  ;;  %v550_v16 = vadd.f32 %v1551_v14, %v1367_v45  ;;  %v541_v17 = vpop.f32.mrb[11].mxu0 }
 0x10d   : > { %v577_v18 = vmax.f32 %v539_v13, 0.0  ;;  %v542_v19 = vadd.f32 %v1367_v45, %v541_v17 }
 0x10e   : > { %v580_v20 = vmax.f32 %v550_v16, 0.0 }
 0x10f   : > { %v578_v21 = vmax.f32 %v542_v19, 0.0 }
 0x110   : > { %v590_v22 = vpack.c.bf16 %v580_v20, %v579_v15 }
 0x111   : > { %v589_v23 = vpack.c.bf16 %v578_v21, %v577_v18  ;;  %v1554_v24 = vpop.f32.mrb[12].mxu0 }
 0x112   : > { %v563_v25 = vadd.f32 %v1554_v24, %v1367_v45  ;;  %v554_v26 = vpop.f32.mrb[13].mxu0 }
 0x113   : > { %754 = vmatmul.mubr.bf16.gmra.mrb[8].mxu1 %v587_v9  ;;  %v555_v27 = vadd.f32 %v1367_v45, %v554_v26  ;;  %v1555_v28 = vpop.f32.mrb[14].mxu0 }
 0x114   : > { %763 = vmatprep.mubr.bf16.mxu1 %v1669_v32  ;;  %v583_v29 = vmax.f32 %v563_v25, 0.0  ;;  %v566_v30 = vadd.f32 %v1555_v28, %v1367_v45  ;;  %v557_v31 = vpop.f32.mrb[15].mxu0 }
 0x115   : > { %v581_v33 = vmax.f32 %v555_v27, 0.0  ;;  %v558_v34 = vadd.f32 %v1367_v45, %v557_v31  ;;  %v611_v45 = vlaneseq }
 0x116   : > { %v584_v35 = vmax.f32 %v566_v30, 0.0 }
 0x117   : > { %v582_v36 = vmax.f32 %v558_v34, 0.0  ;;  %v612_v46 = vshrl.u32 %v611_v45, 7 }
 0x118   : > { %v592_v37 = vpack.c.bf16 %v584_v35, %v583_v29 }
 0x119   : > { %v591_v38 = vpack.c.bf16 %v582_v36, %v581_v33  ;;  %v613_v47 = vsub.s32 0, %v612_v46  ;;  %v617_v49 = vsub.s32 1, %v612_v46 }
 0x11b   : > { %764 = vmatmul.mubr.bf16.gmra.mrb[12].mxu1 %v588_v8  ;;  %v1887_v50 = vrot.slane %v609_v48, %v613_v47  ;;  %v1889_v51 = vrot.slane %v609_v48, %v617_v49 }
 0x11c   : > { %773 = vmatprep.mubr.bf16.mxu1 %v1669_v32 }
 0x123   : > { %774 = vmatmul.mubr.bf16.gmra.mrb[16].mxu1 %v589_v23 }
 0x124   : > { %783 = vmatprep.mubr.bf16.mxu1 %v1669_v32 }
 0x12b   : > { %784 = vmatmul.mubr.bf16.gmra.mrb[20].mxu1 %v590_v22 }
 0x12c   : > { %793 = vmatprep.mubr.bf16.mxu1 %v1669_v32 }
 0x133   : > { %794 = vmatmul.mubr.bf16.gmra.mrb[24].mxu1 %v591_v38 }
 0x134   : > { %803 = vmatprep.mubr.bf16.mxu1 %v1669_v32  ;;  %v1653_v32 = vld [vmem:[%s1994_s7] sm:$0xff]  }
 0x135   : > { %1556 = vmatprep.subr.bf16.mxu1 %v1653_v32 }
 0x136   : > { %1557 = vmatpush3.bf16.msra.mxu1 %v1653_v32 }
 0x137   : > { %1558 = vmatprep.subr.bf16.mxu1 %v1654_v43 }
 0x13a   : > { %1559 = vmatpush3.bf16.msra.mxu1 %v1654_v43 }
 0x13b   : > { %804 = vmatmul.mubr.bf16.gmra.mrb[28].mxu1 %v592_v37  ;;  %1560 = vmatprep.subr.bf16.mxu1 %v1655_v44 }
 0x13e   : > { %1561 = vmatpush3.bf16.msra.mxu1 %v1655_v44 }
 0x1d6   : > { %v735_v52 = vpop.f32.mrb[0].mxu1 }
 0x1d7   : > { %v736_v53 = vadd.f32 %v735_v52, %v1887_v50  ;;  %v737_v54 = vpop.f32.mrb[1].mxu1 }
 0x1d8   : > { %v738_v55 = vadd.f32 %v737_v54, %v1889_v51  ;;  %v739_v56 = vpop.f32.mrb[2].mxu1 }
 0x1d9   : > { %v740_v57 = vadd.f32 %v739_v56, %v1887_v50  ;;  %v741_v58 = vpop.f32.mrb[3].mxu1  ;;  %v814_v60 = vmax.f32 %v736_v53, 0.0 }
 0x1da   : > { %v742_v59 = vadd.f32 %v741_v58, %v1889_v51  ;;  %v815_v62 = vmax.f32 %v738_v55, 0.0 }
 0x1db   : > { %v816_v61 = vmax.f32 %v740_v57, 0.0 }
 0x1dc   : > { %v817_v63 = vmax.f32 %v742_v59, 0.0 }
 0x1dd   : > { %v846_v0 = vpack.c.bf16 %v816_v61, %v814_v60 }
 0x1de   : > { %v847_v1 = vpack.c.bf16 %v817_v63, %v815_v62  ;;  %v745_v2 = vpop.f32.mrb[4].mxu1 }
 0x1df   : > { %v746_v3 = vadd.f32 %v745_v2, %v1887_v50  ;;  %v747_v4 = vpop.f32.mrb[5].mxu1 }
 0x1e0   : > { %v748_v5 = vadd.f32 %v747_v4, %v1889_v51  ;;  %v749_v6 = vpop.f32.mrb[6].mxu1  ;;  %1029 = vmatprep.mubr.bf16.mxu0 %v847_v1 }
 0x1e1   : > { %v750_v7 = vadd.f32 %v749_v6, %v1887_v50  ;;  %v751_v8 = vpop.f32.mrb[7].mxu1  ;;  %1030 = vmatmul.mubr.bf16.vlgmr.msra.gmra.mrb[16].mxu0 %v846_v0  ;;  %v818_v10 = vmax.f32 %v746_v3, 0.0 }
 0x1e2   : > { %v752_v9 = vadd.f32 %v751_v8, %v1889_v51  ;;  %v819_v12 = vmax.f32 %v748_v5, 0.0 }
 0x1e3   : > { %v820_v11 = vmax.f32 %v750_v7, 0.0 }
 0x1e4   : > { %v821_v13 = vmax.f32 %v752_v9, 0.0 }
 0x1e5   : > { %v848_v14 = vpack.c.bf16 %v820_v11, %v818_v10 }
 0x1e6   : > { %v849_v15 = vpack.c.bf16 %v821_v13, %v819_v12  ;;  %v755_v16 = vpop.f32.mrb[8].mxu1 }
 0x1e7   : > { %v756_v17 = vadd.f32 %v755_v16, %v1887_v50  ;;  %v757_v18 = vpop.f32.mrb[9].mxu1 }
 0x1e8   : > { %v758_v19 = vadd.f32 %v757_v18, %v1889_v51  ;;  %v759_v20 = vpop.f32.mrb[10].mxu1  ;;  %1037 = vmatprep.mubr.bf16.mxu0 %v849_v15 }
 0x1e9   : > { %v760_v21 = vadd.f32 %v759_v20, %v1887_v50  ;;  %v761_v22 = vpop.f32.mrb[11].mxu1  ;;  %1038 = vmatmul.mubr.bf16.gmra.mrb[20].mxu0 %v848_v14  ;;  %v822_v24 = vmax.f32 %v756_v17, 0.0 }
 0x1ea   : > { %v762_v23 = vadd.f32 %v761_v22, %v1889_v51  ;;  %v823_v26 = vmax.f32 %v758_v19, 0.0 }
 0x1eb   : > { %v824_v25 = vmax.f32 %v760_v21, 0.0 }
 0x1ec   : > { %v825_v27 = vmax.f32 %v762_v23, 0.0 }
 0x1ed   : > { %v850_v28 = vpack.c.bf16 %v824_v25, %v822_v24 }
 0x1ee   : > { %v851_v29 = vpack.c.bf16 %v825_v27, %v823_v26  ;;  %v765_v30 = vpop.f32.mrb[12].mxu1 }
 0x1ef   : > { %v766_v31 = vadd.f32 %v765_v30, %v1887_v50  ;;  %v767_v33 = vpop.f32.mrb[13].mxu1 }
 0x1f0   : > { %v768_v34 = vadd.f32 %v767_v33, %v1889_v51  ;;  %v769_v35 = vpop.f32.mrb[14].mxu1  ;;  %1045 = vmatprep.mubr.bf16.mxu0 %v851_v29 }
 0x1f1   : > { %v770_v36 = vadd.f32 %v769_v35, %v1887_v50  ;;  %v771_v37 = vpop.f32.mrb[15].mxu1  ;;  %1046 = vmatmul.mubr.bf16.gmra.mrb[24].mxu0 %v850_v28  ;;  %v826_v39 = vmax.f32 %v766_v31, 0.0 }
 0x1f2   : > { %v772_v38 = vadd.f32 %v771_v37, %v1889_v51  ;;  %v827_v41 = vmax.f32 %v768_v34, 0.0 }
 0x1f3   : > { %v828_v40 = vmax.f32 %v770_v36, 0.0 }
 0x1f4   : > { %v829_v42 = vmax.f32 %v772_v38, 0.0 }
 0x1f5   : > { %v852_v32 = vpack.c.bf16 %v828_v40, %v826_v39  ;;  %v1656_v39 = vld [vmem:[%s1994_s7 + $0x18] sm:$0xff]   ;;  %v1659_v40 = vld [vmem:[%s1994_s7 + $0x30] sm:$0xff]  }
 0x1f6   : > { %v853_v43 = vpack.c.bf16 %v829_v42, %v827_v41  ;;  %v775_v44 = vpop.f32.mrb[16].mxu1  ;;  %1562 = vmatprep.subr.bf16.mxu1 %v1656_v39  ;;  %v1660_v41 = vld [vmem:[%s1994_s7 + $0x38] sm:$0xff]  }
 0x1f7   : > { %v776_v45 = vadd.f32 %v775_v44, %v1887_v50  ;;  %v777_v46 = vpop.f32.mrb[17].mxu1  ;;  %1563 = vmatpush3.bf16.msra.mxu1 %v1656_v39 }
 0x1f8   : > { %v778_v47 = vadd.f32 %v777_v46, %v1889_v51  ;;  %v779_v48 = vpop.f32.mrb[18].mxu1  ;;  %1053 = vmatprep.mubr.bf16.mxu0 %v853_v43 }
 0x1f9   : > { %v780_v49 = vadd.f32 %v779_v48, %v1887_v50  ;;  %v781_v52 = vpop.f32.mrb[19].mxu1  ;;  %1054 = vmatmul.mubr.bf16.gmra.mrb[28].mxu0 %v852_v32  ;;  %v830_v54 = vmax.f32 %v776_v45, 0.0  ;;  %v1941_v32 = vld [vmem:[%s1993_s6] ss:$0 sm:$0xff] }
 0x1fa   : > { %v782_v53 = vadd.f32 %v781_v52, %v1889_v51  ;;  %v831_v56 = vmax.f32 %v778_v47, 0.0 }
 0x1fb   : > { %v832_v55 = vmax.f32 %v780_v49, 0.0 }
 0x1fc   : > { %v833_v57 = vmax.f32 %v782_v53, 0.0 }
 0x1fd   : > { %v854_v58 = vpack.c.bf16 %v832_v55, %v830_v54 }
 0x1fe   : > { %v855_v59 = vpack.c.bf16 %v833_v57, %v831_v56  ;;  %v785_v60 = vpop.f32.mrb[20].mxu1 }
 0x1ff   : > { %v786_v61 = vadd.f32 %v785_v60, %v1887_v50  ;;  %v787_v62 = vpop.f32.mrb[21].mxu1 }
 0x200   : > { %v788_v63 = vadd.f32 %v787_v62, %v1889_v51  ;;  %v789_v0 = vpop.f32.mrb[22].mxu1  ;;  %1061 = vmatprep.mubr.bf16.mxu0 %v855_v59 }
 0x201   : > { %v790_v1 = vadd.f32 %v789_v0, %v1887_v50  ;;  %v791_v2 = vpop.f32.mrb[23].mxu1  ;;  %1062 = vmatmul.mubr.bf16.gmra.mrb[32].mxu0 %v854_v58  ;;  %v834_v4 = vmax.f32 %v786_v61, 0.0 }
 0x202   : > { %v792_v3 = vadd.f32 %v791_v2, %v1889_v51  ;;  %v835_v6 = vmax.f32 %v788_v63, 0.0 }
 0x203   : > { %v836_v5 = vmax.f32 %v790_v1, 0.0 }
 0x204   : > { %v837_v7 = vmax.f32 %v792_v3, 0.0 }
 0x205   : > { %v856_v8 = vpack.c.bf16 %v836_v5, %v834_v4 }
 0x206   : > { %v857_v9 = vpack.c.bf16 %v837_v7, %v835_v6  ;;  %v795_v10 = vpop.f32.mrb[24].mxu1 }
 0x207   : > { %v796_v11 = vadd.f32 %v795_v10, %v1887_v50  ;;  %v797_v12 = vpop.f32.mrb[25].mxu1 }
 0x208   : > { %v798_v13 = vadd.f32 %v797_v12, %v1889_v51  ;;  %v799_v14 = vpop.f32.mrb[26].mxu1  ;;  %1069 = vmatprep.mubr.bf16.mxu0 %v857_v9 }
 0x209   : > { %v800_v15 = vadd.f32 %v799_v14, %v1887_v50  ;;  %v801_v16 = vpop.f32.mrb[27].mxu1  ;;  %1070 = vmatmul.mubr.bf16.gmra.mrb[36].mxu0 %v856_v8  ;;  %v838_v18 = vmax.f32 %v796_v11, 0.0 }
 0x20a   : > { %v802_v17 = vadd.f32 %v801_v16, %v1889_v51  ;;  %v839_v20 = vmax.f32 %v798_v13, 0.0 }
 0x20b   : > { %v840_v19 = vmax.f32 %v800_v15, 0.0 }
 0x20c   : > { %v841_v21 = vmax.f32 %v802_v17, 0.0 }
 0x20d   : > { %v858_v22 = vpack.c.bf16 %v840_v19, %v838_v18 }
 0x20e   : > { %v859_v23 = vpack.c.bf16 %v841_v21, %v839_v20  ;;  %v805_v24 = vpop.f32.mrb[28].mxu1 }
 0x20f   : > { %v806_v25 = vadd.f32 %v805_v24, %v1887_v50  ;;  %v807_v26 = vpop.f32.mrb[29].mxu1 }
 0x210   : > { %v808_v27 = vadd.f32 %v807_v26, %v1889_v51  ;;  %v809_v28 = vpop.f32.mrb[30].mxu1  ;;  %1077 = vmatprep.mubr.bf16.mxu0 %v859_v23 }
 0x211   : > { %v810_v29 = vadd.f32 %v809_v28, %v1887_v50  ;;  %v811_v30 = vpop.f32.mrb[31].mxu1  ;;  %1078 = vmatmul.mubr.bf16.gmra.mrb[40].mxu0 %v858_v22  ;;  %v842_v33 = vmax.f32 %v806_v25, 0.0  ;;  %v1657_v50 = vld [vmem:[%s1994_s7 + $0x20] sm:$0xff]  }
 0x212   : > { %v812_v31 = vadd.f32 %v811_v30, %v1889_v51  ;;  %v843_v35 = vmax.f32 %v808_v27, 0.0  ;;  %1564 = vmatprep.subr.bf16.mxu1 %v1657_v50  ;;  %v1658_v51 = vld [vmem:[%s1994_s7 + $0x28] sm:$0xff]  }
 0x213   : > { %v844_v34 = vmax.f32 %v810_v29, 0.0  ;;  %1565 = vmatpush3.bf16.msra.mxu1 %v1657_v50 }
 0x214   : > { %v845_v36 = vmax.f32 %v812_v31, 0.0  ;;  %1566 = vmatprep.subr.bf16.mxu1 %v1658_v51 }
 0x215   : > { %v860_v37 = vpack.c.bf16 %v844_v34, %v842_v33 }
 0x216   : > { %v861_v38 = vpack.c.bf16 %v845_v36, %v843_v35 }
 0x217   : > { %1567 = vmatpush3.bf16.msra.mxu1 %v1658_v51 }
 0x218   : > { %1085 = vmatprep.mubr.bf16.mxu0 %v861_v38  ;;  %1568 = vmatprep.subr.bf16.mxu1 %v1659_v40 }
 0x219   : > { %1086 = vmatmul.mubr.bf16.gmra.mrb[44].mxu0 %v860_v37 }
 0x21b   : > { %1569 = vmatpush3.bf16.msra.mxu1 %v1659_v40 }
 0x21c   : > { %1570 = vmatprep.subr.bf16.mxu1 %v1660_v41 }
 0x21f   : > { %1571 = vmatpush3.bf16.msra.mxu1 %v1660_v41 }
 0x2b4   : > { %v1460_v42 = vpop.f32.mrb[16].mxu0 }
 0x2b5   : > { %v1461_v43 = vpop.f32.mrb[17].mxu0 }
 0x2b6   : > { %v1462_v44 = vadd.f32 %v1461_v43, %v1460_v42  ;;  %v1463_v45 = vpop.f32.mrb[18].mxu0 }
 0x2b7   : > { %v1464_v46 = vpop.f32.mrb[19].mxu0 }
 0x2b8   : > { %v1032_v47 = vadd.f32 %v1462_v44, %v1941_v32  ;;  %v1465_v48 = vadd.f32 %v1464_v46, %v1463_v45 }
 0x2ba   : > { %v1035_v49 = vadd.f32 %v1465_v48, %v1941_v32  ;;  %v1094_v52 = vmax.f32 %v1032_v47, 0.0 }
 0x2bc   : > { %v1095_v53 = vmax.f32 %v1035_v49, 0.0  ;;  %v1466_v54 = vpop.f32.mrb[20].mxu0 }
 0x2bd   : > { %v1467_v55 = vpop.f32.mrb[21].mxu0 }
 0x2be   : > { %v1468_v56 = vadd.f32 %v1467_v55, %v1466_v54  ;;  %v1469_v57 = vpop.f32.mrb[22].mxu0  ;;  %v1110_v58 = vpack.c.bf16 %v1095_v53, %v1094_v52 }
 0x2bf   : > { %v1470_v59 = vpop.f32.mrb[23].mxu0 }
 0x2c0   : > { %v1040_v60 = vadd.f32 %v1468_v56, %v1941_v32  ;;  %v1471_v61 = vadd.f32 %v1470_v59, %v1469_v57  ;;  %1572 = vmatprep.mubr.bf16.mxu1 %v1110_v58 }
 0x2c2   : > { %v1043_v62 = vadd.f32 %v1471_v61, %v1941_v32  ;;  %v1096_v63 = vmax.f32 %v1040_v60, 0.0 }
 0x2c4   : > { %v1097_v0 = vmax.f32 %v1043_v62, 0.0  ;;  %v1472_v1 = vpop.f32.mrb[24].mxu0 }
 0x2c5   : > { %v1473_v2 = vpop.f32.mrb[25].mxu0 }
 0x2c6   : > { %v1111_v3 = vpack.c.bf16 %v1097_v0, %v1096_v63  ;;  %v1474_v4 = vadd.f32 %v1473_v2, %v1472_v1  ;;  %v1475_v5 = vpop.f32.mrb[26].mxu0 }
 0x2c7   : > { %v1476_v6 = vpop.f32.mrb[27].mxu0 }
 0x2c8   : > { %v1048_v7 = vadd.f32 %v1474_v4, %v1941_v32  ;;  %v1477_v8 = vadd.f32 %v1476_v6, %v1475_v5  ;;  %1573 = vmatmul.mubr.bf16.vlgmr.msra.gmra.mrb[32].mxu1 %v1111_v3  ;;  %v1417_v5 = vld [vmem:[%s1995_s8] ss:$0 sm:$0xff] }
 0x2ca   : > { %v1051_v9 = vadd.f32 %v1477_v8, %v1941_v32  ;;  %v1098_v10 = vmax.f32 %v1048_v7, 0.0 }
 0x2cc   : > { %v1099_v11 = vmax.f32 %v1051_v9, 0.0  ;;  %v1478_v12 = vpop.f32.mrb[28].mxu0 }
 0x2cd   : > { %v1479_v13 = vpop.f32.mrb[29].mxu0 }
 0x2ce   : > { %v1480_v14 = vadd.f32 %v1479_v13, %v1478_v12  ;;  %v1481_v15 = vpop.f32.mrb[30].mxu0  ;;  %v1112_v16 = vpack.c.bf16 %v1099_v11, %v1098_v10 }
 0x2cf   : > { %v1482_v17 = vpop.f32.mrb[31].mxu0 }
 0x2d0   : > { %v1056_v18 = vadd.f32 %v1480_v14, %v1941_v32  ;;  %v1483_v19 = vadd.f32 %v1482_v17, %v1481_v15  ;;  %1576 = vmatprep.mubr.bf16.mxu1 %v1112_v16 }
 0x2d2   : > { %v1059_v20 = vadd.f32 %v1483_v19, %v1941_v32  ;;  %v1100_v21 = vmax.f32 %v1056_v18, 0.0 }
 0x2d4   : > { %v1101_v22 = vmax.f32 %v1059_v20, 0.0  ;;  %v1484_v23 = vpop.f32.mrb[32].mxu0 }
 0x2d5   : > { %v1485_v24 = vpop.f32.mrb[33].mxu0 }
 0x2d6   : > { %v1486_v25 = vadd.f32 %v1485_v24, %v1484_v23  ;;  %v1487_v26 = vpop.f32.mrb[34].mxu0  ;;  %v1113_v27 = vpack.c.bf16 %v1101_v22, %v1100_v21 }
 0x2d7   : > { %v1488_v28 = vpop.f32.mrb[35].mxu0 }
 0x2d8   : > { %v1064_v29 = vadd.f32 %v1486_v25, %v1941_v32  ;;  %v1489_v30 = vadd.f32 %v1488_v28, %v1487_v26  ;;  %1577 = vmatmul.mubr.bf16.gmra.mrb[36].mxu1 %v1113_v27 }
 0x2da   : > { %v1067_v31 = vadd.f32 %v1489_v30, %v1941_v32  ;;  %v1102_v33 = vmax.f32 %v1064_v29, 0.0 }
 0x2dc   : > { %v1103_v34 = vmax.f32 %v1067_v31, 0.0  ;;  %v1490_v35 = vpop.f32.mrb[36].mxu0 }
 0x2dd   : > { %v1491_v36 = vpop.f32.mrb[37].mxu0 }
 0x2de   : > { %v1492_v37 = vadd.f32 %v1491_v36, %v1490_v35  ;;  %v1493_v38 = vpop.f32.mrb[38].mxu0  ;;  %v1114_v39 = vpack.c.bf16 %v1103_v34, %v1102_v33 }
 0x2df   : > { %v1494_v50 = vpop.f32.mrb[39].mxu0 }
 0x2e0   : > { %v1072_v51 = vadd.f32 %v1492_v37, %v1941_v32  ;;  %v1495_v40 = vadd.f32 %v1494_v50, %v1493_v38  ;;  %1580 = vmatprep.mubr.bf16.mxu1 %v1114_v39 }
 0x2e2   : > { %v1075_v41 = vadd.f32 %v1495_v40, %v1941_v32  ;;  %v1104_v42 = vmax.f32 %v1072_v51, 0.0 }
 0x2e4   : > { %v1105_v43 = vmax.f32 %v1075_v41, 0.0  ;;  %v1496_v44 = vpop.f32.mrb[40].mxu0 }
 0x2e5   : > { %v1497_v45 = vpop.f32.mrb[41].mxu0 }
 0x2e6   : > { %v1498_v46 = vadd.f32 %v1497_v45, %v1496_v44  ;;  %v1499_v47 = vpop.f32.mrb[42].mxu0  ;;  %v1115_v48 = vpack.c.bf16 %v1105_v43, %v1104_v42 }
 0x2e7   : > { %v1500_v49 = vpop.f32.mrb[43].mxu0 }
 0x2e8   : > { %v1080_v52 = vadd.f32 %v1498_v46, %v1941_v32  ;;  %v1501_v53 = vadd.f32 %v1500_v49, %v1499_v47  ;;  %1581 = vmatmul.mubr.bf16.gmra.mrb[40].mxu1 %v1115_v48 }
 0x2ea   : > { %v1083_v54 = vadd.f32 %v1501_v53, %v1941_v32  ;;  %v1106_v55 = vmax.f32 %v1080_v52, 0.0 }
 0x2ec   : > { %v1107_v56 = vmax.f32 %v1083_v54, 0.0  ;;  %v1502_v57 = vpop.f32.mrb[44].mxu0 }
 0x2ed   : > { %v1503_v58 = vpop.f32.mrb[45].mxu0 }
 0x2ee   : > { %v1504_v59 = vadd.f32 %v1503_v58, %v1502_v57  ;;  %v1505_v60 = vpop.f32.mrb[46].mxu0  ;;  %v1116_v61 = vpack.c.bf16 %v1107_v56, %v1106_v55 }
 0x2ef   : > { %v1506_v62 = vpop.f32.mrb[47].mxu0 }
 0x2f0   : > { %v1088_v63 = vadd.f32 %v1504_v59, %v1941_v32  ;;  %v1507_v0 = vadd.f32 %v1506_v62, %v1505_v60  ;;  %1584 = vmatprep.mubr.bf16.mxu1 %v1116_v61 }
 0x2f2   : > { %v1091_v1 = vadd.f32 %v1507_v0, %v1941_v32  ;;  %v1108_v2 = vmax.f32 %v1088_v63, 0.0 }
 0x2f4   : > { %v1109_v3 = vmax.f32 %v1091_v1, 0.0 }
 0x2f6   : > { %v1117_v4 = vpack.c.bf16 %v1109_v3, %v1108_v2 }
 0x2f8   : > { %1585 = vmatmul.mubr.bf16.gmra.mrb[44].mxu1 %v1117_v4 }
 0x39b   : > { %v1574_v6 = vpop.f32.mrb[32].mxu1 }
 0x39c   : > { %v1232_v32 = vadd.f32 %v1574_v6, %v1417_v5  ;;  %v1223_v7 = vpop.f32.mrb[33].mxu1 }
 0x39d   : > { %v1224_v8 = vadd.f32 %v1417_v5, %v1223_v7  ;;  %v1575_v9 = vpop.f32.mrb[34].mxu1 }
 0x39e   : > { %1288 = vst [vmem:[%s1966_s29 + $0x10] sm:$0xff] %v1232_v32  ;;  %v1235_v10 = vadd.f32 %v1575_v9, %v1417_v5  ;;  %v1226_v11 = vpop.f32.mrb[35].mxu1 }
 0x39f   : > { %1286 = vst [vmem:[%s1966_s29] sm:$0xff] %v1224_v8  ;;  %v1227_v12 = vadd.f32 %v1417_v5, %v1226_v11 }
 0x3a0   : > { %1289 = vst [vmem:[%s1966_s29 + $0x18] sm:$0xff] %v1235_v10 }
 0x3a1   : > { %1287 = vst [vmem:[%s1966_s29 + $0x8] sm:$0xff] %v1227_v12 }
 0x3ab   : > { %v1578_v13 = vpop.f32.mrb[36].mxu1 }
 0x3ac   : > { %v1248_v14 = vadd.f32 %v1578_v13, %v1417_v5  ;;  %v1239_v15 = vpop.f32.mrb[37].mxu1 }
 0x3ad   : > { %v1240_v16 = vadd.f32 %v1417_v5, %v1239_v15  ;;  %v1579_v17 = vpop.f32.mrb[38].mxu1 }
 0x3ae   : > { %1292 = vst [vmem:[%s1966_s29 + $0x30] sm:$0xff] %v1248_v14  ;;  %v1251_v18 = vadd.f32 %v1579_v17, %v1417_v5  ;;  %v1242_v19 = vpop.f32.mrb[39].mxu1 }
 0x3af   : > { %1290 = vst [vmem:[%s1966_s29 + $0x20] sm:$0xff] %v1240_v16  ;;  %v1243_v20 = vadd.f32 %v1417_v5, %v1242_v19 }
 0x3b0   : > { %1293 = vst [vmem:[%s1966_s29 + $0x38] sm:$0xff] %v1251_v18 }
 0x3b1   : > { %1291 = vst [vmem:[%s1966_s29 + $0x28] sm:$0xff] %v1243_v20 }
 0x3bb   : > { %v1582_v21 = vpop.f32.mrb[40].mxu1 }
 0x3bc   : > { %v1264_v22 = vadd.f32 %v1582_v21, %v1417_v5  ;;  %v1255_v23 = vpop.f32.mrb[41].mxu1 }
 0x3bd   : > { %v1256_v24 = vadd.f32 %v1417_v5, %v1255_v23  ;;  %v1583_v25 = vpop.f32.mrb[42].mxu1 }
 0x3be   : > { %1296 = vst [vmem:[%s1966_s29 + $0x50] sm:$0xff] %v1264_v22  ;;  %v1267_v26 = vadd.f32 %v1583_v25, %v1417_v5  ;;  %v1258_v27 = vpop.f32.mrb[43].mxu1 }
 0x3bf   : > { %1294 = vst [vmem:[%s1966_s29 + $0x40] sm:$0xff] %v1256_v24  ;;  %v1259_v28 = vadd.f32 %v1417_v5, %v1258_v27 }
 0x3c0   : > { %1297 = vst [vmem:[%s1966_s29 + $0x58] sm:$0xff] %v1267_v26 }
 0x3c1   : > { %1295 = vst [vmem:[%s1966_s29 + $0x48] sm:$0xff] %v1259_v28 }
 0x3cb   : > { %v1586_v29 = vpop.f32.mrb[44].mxu1 }
 0x3cc   : > { %v1280_v30 = vadd.f32 %v1586_v29, %v1417_v5  ;;  %v1271_v31 = vpop.f32.mrb[45].mxu1 }
 0x3cd   : > { %v1272_v33 = vadd.f32 %v1417_v5, %v1271_v31  ;;  %v1587_v34 = vpop.f32.mrb[46].mxu1 }
 0x3ce   : > { %1300 = vst [vmem:[%s1966_s29 + $0x70] sm:$0xff] %v1280_v30  ;;  %v1283_v35 = vadd.f32 %v1587_v34, %v1417_v5  ;;  %v1274_v36 = vpop.f32.mrb[47].mxu1 }
 0x3cf   : > { %1298 = vst [vmem:[%s1966_s29 + $0x60] sm:$0xff] %v1272_v33  ;;  %v1275_v37 = vadd.f32 %v1417_v5, %v1274_v36 }
 0x3d0   : > { %1301 = vst [vmem:[%s1966_s29 + $0x78] sm:$0xff] %v1283_v35 }
 0x3d1   : > { %1299 = vst [vmem:[%s1966_s29 + $0x68] sm:$0xff] %v1275_v37 }
 0x3d2 PF: > { %s19_s30 = sadd.s32 1, %s1667_s30  }
 0x3d3   : > { %p16_p4 = scmp.ge.s32.totalorder %s19_s30, 4  }
 0x3d5   :  { %18 = sbr.rel (!%p16_p4) target bundleno = 1 (0x1), region = 86 }

</bundles_post_ra>
